<compile_context>
chip_gen: v7x
topology: tpu7x:2x2x1
jax: 0.10.0
libtpu: 0.0.40
codegen_flags: <defaults>
</compile_context>

<pallas_src>
import functools

import jax
import jax.numpy as jnp
from jax.experimental import pallas as pl
from jax.experimental.pallas import tpu as pltpu

LANES = 128
SUBLANES = 8
BLOCK_ROWS_MAX = 8192          # (8192, 128) f32 = 4 MiB per input per block
TINY_N = 1 << 16               # below this a kernel launch cannot win -> pure JAX
VMEM_LIMIT_BYTES = 32 * 1024 * 1024


def _num_tensorcores():
    """2 on v7x (2 TensorCores per chip), 1 on v5e/v6e/unknown/non-TPU."""
    try:
        dev = jax.devices()[0]
        if getattr(dev, "platform", "") != "tpu":
            return 1
        kind = (getattr(dev, "device_kind", "") or "").lower()
        if "v7" in kind:
            return 2
    except Exception:  # pragma: no cover - be conservative on exotic setups
        pass
    return 1


def _row_align(dtype):
    """Second-minor tile size: 8 rows for 32-bit, 16 for 16-bit, 32 for 8-bit."""
    pack = max(1, 4 // jnp.dtype(dtype).itemsize)
    return SUBLANES * pack


def _combine(s_gt, s_pos, s_neg, n):
    """Scalar glue reproducing BBCEWithLogitLoss from the three reductions."""
    nf = jnp.float32(n)
    eps = jnp.float32(1e-10)
    count_pos = s_gt + eps
    count_neg = nf - s_gt            # == sum(1 - gt) (exact in real arithmetic)
    ratio = count_neg / count_pos    # pos_weight
    w_neg = count_pos / (count_pos + count_neg)
    mean_loss = (ratio * s_pos + s_neg) / nf
    return w_neg * mean_loss


def _partial_sums_jax(pred_flat, gt_flat):
    """Plain-JAX partials: (sum gt, sum gt*softplus(-x), sum (1-gt)*softplus(x))."""
    x = pred_flat.astype(jnp.float32)
    y = gt_flat.astype(jnp.float32)
    sp_neg = jnp.maximum(-x, 0.0) + jnp.log1p(jnp.exp(-jnp.abs(x)))
    return (jnp.sum(y),
            jnp.sum(y * sp_neg),
            jnp.sum((1.0 - y) * (x + sp_neg)))


def _bbce_reduce_kernel(pred_ref, gt_ref, gt_out, pos_out, neg_out, *,
                        rows_total, block_rows, steps_per_core, n_full_blocks):
    """Accumulate per-(sublane, lane) partial sums of
         gt,  gt*softplus(-x),  (1-gt)*softplus(x)
    into a (8, 128) per-core output slab.  The final cross-lane / cross-core
    reduce is done in the JAX glue."""
    c = pl.program_id(0)   # core shard (parallel axis)
    i = pl.program_id(1)   # reduction step (arbitrary axis)

    @pl.when(i == 0)
    def _init():
        gt_out[...] = jnp.zeros_like(gt_out)
        pos_out[...] = jnp.zeros_like(pos_out)
        neg_out[...] = jnp.zeros_like(neg_out)

    # Cast in-kernel only (inputs may arrive bf16/int8; keep HBM traffic narrow).
    x = pred_ref[...].astype(jnp.float32)
    y = gt_ref[...].astype(jnp.float32)

    # Numerically stable softplus(-x) = max(-x,0) + log1p(exp(-|x|));
    # softplus(x) = x + softplus(-x).
    sp_neg_x = jnp.maximum(-x, 0.0) + jnp.log1p(jnp.exp(-jnp.abs(x)))
    pos_term = y * sp_neg_x                  # gt * softplus(-x)   (ratio applied later)
    neg_term = (1.0 - y) * (x + sp_neg_x)    # (1 - gt) * softplus(x)

    lb = c * steps_per_core + i              # logical block index (duplicated blocks
                                             # are clamped in the index_map and
                                             # fully masked here)

    def _accum(yv, pv, nv):
        # (block_rows,128) -> (block_rows//8, 8, 128), sum over axis 0:
        # pure VPU vector adds, no per-step cross-lane reduction.
        def fold(t):
            return t.reshape(block_rows // SUBLANES, SUBLANES, LANES).sum(axis=0)
        gt_out[...] += fold(yv)
        pos_out[...] += fold(pv)
        neg_out[...] += fold(nv)

    @pl.when(lb < n_full_blocks)             # fully-valid interior block: no mask math
    def _fast():
        _accum(y, pos_term, neg_term)

    @pl.when(lb >= n_full_blocks)            # tail / duplicated block: mask invalid rows
    def _masked():
        # Inputs are lane-aligned, so validity is purely per-row.  `valid_rows`
        # is <= 0 for duplicated (clamped) blocks -> they contribute nothing.
        valid_rows = rows_total - lb * block_rows
        row = jax.lax.broadcasted_iota(jnp.int32, (block_rows, LANES), 0)
        m = row < valid_rows
        zero = jnp.float32(0.0)
        _accum(jnp.where(m, y, zero),
               jnp.where(m, pos_term, zero),
               jnp.where(m, neg_term, zero))


def bbce_with_logit_loss(pred, gt, *, min_kernel_elems=TINY_N):
    """Balanced BCEWithLogitLoss forward; returns a float32 scalar."""
    assert pred.shape == gt.shape
    n = pred.size

    flat_p = pred.reshape(-1)   # row-major flatten: free (no data movement)
    flat_g = gt.reshape(-1)

    row_align = max(_row_align(pred.dtype), _row_align(gt.dtype))
    rem = n % LANES
    n_main = n - rem
    rows = n_main // LANES

    # Tiny-input fast path: grid/launch overhead can't win -> pure JAX.
    if n < min_kernel_elems or rows < row_align:
        return _combine(*_partial_sums_jax(flat_p, flat_g), n)

    # Non-lane-aligned remainder (< 128 elements) folded in with plain JAX;
    # avoids the full-array jnp.pad copy of the previous version.
    if rem:
        t_gt, t_pos, t_neg = _partial_sums_jax(flat_p[n_main:], flat_g[n_main:])
        flat_p = flat_p[:n_main]
        flat_g = flat_g[:n_main]
    else:
        t_gt = t_pos = t_neg = jnp.float32(0.0)

    p2 = flat_p.reshape(rows, LANES)   # free bitcast when rem == 0
    g2 = flat_g.reshape(rows, LANES)

    num_cores = _num_tensorcores()
    block_rows = min(BLOCK_ROWS_MAX, (rows // row_align) * row_align)
    total_blocks = -(-rows // block_rows)
    steps_per_core = -(-total_blocks // num_cores)
    n_full_blocks = rows // block_rows          # blocks with every row valid
    last_block = total_blocks - 1

    def in_map(c, i):
        lb = c * steps_per_core + i
        # Clamp out-of-range (duplicated) blocks onto the last real block; their
        # contribution is fully masked inside the kernel.
        return (jnp.minimum(lb, last_block), 0)

    in_spec = pl.BlockSpec((block_rows, LANES), in_map)
    out_spec = pl.BlockSpec((SUBLANES, LANES), lambda c, i: (c, 0))
    out_shape = jax.ShapeDtypeStruct((num_cores * SUBLANES, LANES), jnp.float32)

    kernel = functools.partial(
        _bbce_reduce_kernel,
        rows_total=rows,
        block_rows=block_rows,
        steps_per_core=steps_per_core,
        n_full_blocks=n_full_blocks,
    )

    bytes_in = n_main * (jnp.dtype(pred.dtype).itemsize + jnp.dtype(gt.dtype).itemsize)
    cost = pl.CostEstimate(
        flops=12 * n_main,
        transcendentals=2 * n_main,
        bytes_accessed=bytes_in + 3 * num_cores * SUBLANES * LANES * 4,
    )

    gt_parts, pos_parts, neg_parts = pl.pallas_call(
        kernel,
        out_shape=(out_shape,) * 3,
        grid=(num_cores, steps_per_core),
        in_specs=[in_spec, in_spec],
        out_specs=(out_spec,) * 3,
        compiler_params=pltpu.CompilerParams(
            dimension_semantics=("parallel", "arbitrary"),
            vmem_limit_bytes=VMEM_LIMIT_BYTES,
        ),
        cost_estimate=cost,
    )(p2, g2)

    # Final (cheap) cross-lane / cross-core reduction and scalar glue.
    s_gt = jnp.sum(gt_parts) + t_gt
    s_pos = jnp.sum(pos_parts) + t_pos        # sum gt * softplus(-x)
    s_neg = jnp.sum(neg_parts) + t_neg        # sum (1-gt) * softplus(x)
    return _combine(s_gt, s_pos, s_neg, n)


def _reference(pred, gt):
    """Pure-JAX reference mirroring the PyTorch BBCEWithLogitLoss."""
    pred = pred.astype(jnp.float32)
    gt = gt.astype(jnp.float32)
    eps = 1e-10
    count_pos = jnp.sum(gt) + eps
    count_neg = jnp.sum(1.0 - gt)
    ratio = count_neg / count_pos
    w_neg = count_pos / (count_pos + count_neg)
    sp_neg = jnp.maximum(-pred, 0.0) + jnp.log1p(jnp.exp(-jnp.abs(pred)))
    per_elem = ratio * gt * sp_neg + (1.0 - gt) * (pred + sp_neg)
    return w_neg * jnp.mean(per_elem)


if __name__ == "__main__":
    key = jax.random.PRNGKey(0)
    k1, k2, k3, k4 = jax.random.split(key, 4)

    # (a) Small segmentation-style logit/gt maps (NCHW), consistent with the
    #     module.  Exercised through the auto path (pure-JAX tiny input) AND
    #     with the kernel forced on, so the Pallas kernel definitely runs.
    pred_s = jax.random.normal(k1, (2, 4, 16, 16), dtype=jnp.float32) * 2.0
    gt_s = jax.random.bernoulli(k2, p=0.3, shape=(2, 4, 16, 16)).astype(jnp.float32)

    # (b) A larger, NON-lane-aligned mask (257*257 = 66049 elements): exercises
    #     the streaming kernel, the partial edge block, and the JAX remainder.
    pred_l = jax.random.normal(k3, (1, 1, 257, 257), dtype=jnp.float32) * 2.0
    gt_l = jax.random.bernoulli(k4, p=0.3, shape=(1, 1, 257, 257)).astype(jnp.float32)

    loss_s_kernel = jax.block_until_ready(
        bbce_with_logit_loss(pred_s, gt_s, min_kernel_elems=0))   # force kernel path
    loss_s_auto = jax.block_until_ready(bbce_with_logit_loss(pred_s, gt_s))
    loss_l = jax.block_until_ready(bbce_with_logit_loss(pred_l, gt_l))
    # bf16 caller interface (what v5e/v6e should feed): same kernel, tighter HBM.
    loss_l_bf16 = jax.block_until_ready(
        bbce_with_logit_loss(pred_l.astype(jnp.bfloat16), gt_l.astype(jnp.bfloat16)))

    ref_s = _reference(pred_s, gt_s)
    ref_l = _reference(pred_l, gt_l)
    ref_l_bf16 = _reference(pred_l.astype(jnp.bfloat16), gt_l.astype(jnp.bfloat16))

    assert jnp.isfinite(loss_s_kernel) and jnp.isfinite(loss_l), "loss is not finite"
    assert jnp.abs(loss_s_kernel - ref_s) < 1e-4, (loss_s_kernel, ref_s)
    assert jnp.abs(loss_s_auto - ref_s) < 1e-4, (loss_s_auto, ref_s)
    assert jnp.abs(loss_l - ref_l) < 1e-4, (loss_l, ref_l)
    assert jnp.abs(loss_l_bf16 - ref_l_bf16) < 1e-4, (loss_l_bf16, ref_l_bf16)
    print("KERNEL_OK")
</pallas_src>

<mosaic_0001>
module attributes {stable_mosaic.version = 11 : i64} {
  func.func @_bbce_reduce_kernel(%arg0: i32, %arg1: i32, %arg2: memref<16x128xf32, #tpu.memory_space<vmem>>, %arg3: memref<16x128xf32, #tpu.memory_space<vmem>>, %arg4: memref<8x128xf32, #tpu.memory_space<vmem>>, %arg5: memref<8x128xf32, #tpu.memory_space<vmem>>, %arg6: memref<8x128xf32, #tpu.memory_space<vmem>>) attributes {dimension_semantics = [#tpu.dimension_semantics<parallel>, #tpu.dimension_semantics<arbitrary>], iteration_bounds = array<i64: 1, 1>, scalar_prefetch = 0 : i64, scratch_operands = 0 : i64, tpu.core_type = #tpu.core_type<tc>, window_params = [{transform_indices = @transform_0, window_bounds = array<i64: 16, 128>}, {transform_indices = @transform_1, window_bounds = array<i64: 16, 128>}, {transform_indices = @transform_2, window_bounds = array<i64: 8, 128>}, {transform_indices = @transform_3, window_bounds = array<i64: 8, 128>}, {transform_indices = @transform_4, window_bounds = array<i64: 8, 128>}]} {
    %c0_i32 = arith.constant 0 : i32
    %0 = arith.cmpi eq, %arg1, %c0_i32 : i32
    %1 = arith.extui %0 : i1 to i32
    %c0_i32_0 = arith.constant 0 : i32
    %2 = arith.cmpi ne, %1, %c0_i32_0 : i32
    scf.if %2 {
      %cst_11 = arith.constant 0.000000e+00 : f32
      %28 = vector.broadcast %cst_11 : f32 to vector<8x128xf32>
      %c0_12 = arith.constant 0 : index
      %c0_13 = arith.constant 0 : index
      %29 = vector.load %arg4[%c0_12, %c0_13] : memref<8x128xf32, #tpu.memory_space<vmem>>, vector<8x128xf32>
      tpu.vector_store %arg4[%c0_12, %c0_13], %28 {strides = array<i32>} : memref<8x128xf32, #tpu.memory_space<vmem>>, vector<8x128xf32>,
      %cst_14 = arith.constant 0.000000e+00 : f32
      %30 = vector.broadcast %cst_14 : f32 to vector<8x128xf32>
      %c0_15 = arith.constant 0 : index
      %c0_16 = arith.constant 0 : index
      %31 = vector.load %arg5[%c0_15, %c0_16] : memref<8x128xf32, #tpu.memory_space<vmem>>, vector<8x128xf32>
      tpu.vector_store %arg5[%c0_15, %c0_16], %30 {strides = array<i32>} : memref<8x128xf32, #tpu.memory_space<vmem>>, vector<8x128xf32>,
      %cst_17 = arith.constant 0.000000e+00 : f32
      %32 = vector.broadcast %cst_17 : f32 to vector<8x128xf32>
      %c0_18 = arith.constant 0 : index
      %c0_19 = arith.constant 0 : index
      %33 = vector.load %arg6[%c0_18, %c0_19] : memref<8x128xf32, #tpu.memory_space<vmem>>, vector<8x128xf32>
      tpu.vector_store %arg6[%c0_18, %c0_19], %32 {strides = array<i32>} : memref<8x128xf32, #tpu.memory_space<vmem>>, vector<8x128xf32>,
    } else {
    }
    %c0 = arith.constant 0 : index
    %c0_1 = arith.constant 0 : index
    %3 = vector.load %arg2[%c0, %c0_1] : memref<16x128xf32, #tpu.memory_space<vmem>>, vector<16x128xf32>
    %c0_2 = arith.constant 0 : index
    %c0_3 = arith.constant 0 : index
    %4 = vector.load %arg3[%c0_2, %c0_3] : memref<16x128xf32, #tpu.memory_space<vmem>>, vector<16x128xf32>
    %cst = arith.constant 0.000000e+00 : f32
    %5 = vector.broadcast %cst : f32 to vector<16x128xf32>
    %6 = arith.subf %5, %3 : vector<16x128xf32>
    %cst_4 = arith.constant 0.000000e+00 : f32
    %7 = vector.broadcast %cst_4 : f32 to vector<16x128xf32>
    %8 = arith.maximumf %6, %7 : vector<16x128xf32>
    %9 = math.absf %3 : vector<16x128xf32>
    %cst_5 = arith.constant 0.000000e+00 : f32
    %10 = vector.broadcast %cst_5 : f32 to vector<16x128xf32>
    %11 = arith.subf %10, %9 : vector<16x128xf32>
    %12 = math.exp %11 : vector<16x128xf32>
    %13 = math.log1p %12 : vector<16x128xf32>
    %14 = arith.addf %8, %13 : vector<16x128xf32>
    %15 = arith.mulf %4, %14 : vector<16x128xf32>
    %cst_6 = arith.constant 1.000000e+00 : f32
    %16 = vector.broadcast %cst_6 : f32 to vector<16x128xf32>
    %17 = arith.subf %16, %4 : vector<16x128xf32>
    %18 = arith.addf %3, %14 : vector<16x128xf32>
    %19 = arith.mulf %17, %18 : vector<16x128xf32>
    %c1_i32 = arith.constant 1 : i32
    %20 = arith.muli %arg0, %c1_i32 : i32
    %21 = arith.addi %20, %arg1 : i32
    %c1_i32_7 = arith.constant 1 : i32
    %22 = arith.cmpi slt, %21, %c1_i32_7 : i32
    %23 = arith.extui %22 : i1 to i32
    %c0_i32_8 = arith.constant 0 : i32
    %24 = arith.cmpi ne, %23, %c0_i32_8 : i32
    scf.if %24 {
      %c0_11 = arith.constant 0 : index
      %c0_12 = arith.constant 0 : index
      %28 = vector.load %arg4[%c0_11, %c0_12] : memref<8x128xf32, #tpu.memory_space<vmem>>, vector<8x128xf32>
      %29 = vector.shape_cast %4 : vector<16x128xf32> to vector<2x8x128xf32>
      %cst_13 = arith.constant dense<0.000000e+00> : vector<8x128xf32>
      %30 = vector.multi_reduction <add>, %29, %cst_13 [0] : vector<2x8x128xf32> to vector<8x128xf32>
      %31 = arith.addf %28, %30 : vector<8x128xf32>
      %c0_14 = arith.constant 0 : index
      %c0_15 = arith.constant 0 : index
      %32 = vector.load %arg4[%c0_14, %c0_15] : memref<8x128xf32, #tpu.memory_space<vmem>>, vector<8x128xf32>
      tpu.vector_store %arg4[%c0_14, %c0_15], %31 {strides = array<i32>} : memref<8x128xf32, #tpu.memory_space<vmem>>, vector<8x128xf32>,
      %c0_16 = arith.constant 0 : index
      %c0_17 = arith.constant 0 : index
      %33 = vector.load %arg5[%c0_16, %c0_17] : memref<8x128xf32, #tpu.memory_space<vmem>>, vector<8x128xf32>
      %34 = vector.shape_cast %15 : vector<16x128xf32> to vector<2x8x128xf32>
      %cst_18 = arith.constant dense<0.000000e+00> : vector<8x128xf32>
      %35 = vector.multi_reduction <add>, %34, %cst_18 [0] : vector<2x8x128xf32> to vector<8x128xf32>
      %36 = arith.addf %33, %35 : vector<8x128xf32>
      %c0_19 = arith.constant 0 : index
      %c0_20 = arith.constant 0 : index
      %37 = vector.load %arg5[%c0_19, %c0_20] : memref<8x128xf32, #tpu.memory_space<vmem>>, vector<8x128xf32>
      tpu.vector_store %arg5[%c0_19, %c0_20], %36 {strides = array<i32>} : memref<8x128xf32, #tpu.memory_space<vmem>>, vector<8x128xf32>,
      %c0_21 = arith.constant 0 : index
      %c0_22 = arith.constant 0 : index
      %38 = vector.load %arg6[%c0_21, %c0_22] : memref<8x128xf32, #tpu.memory_space<vmem>>, vector<8x128xf32>
      %39 = vector.shape_cast %19 : vector<16x128xf32> to vector<2x8x128xf32>
      %cst_23 = arith.constant dense<0.000000e+00> : vector<8x128xf32>
      %40 = vector.multi_reduction <add>, %39, %cst_23 [0] : vector<2x8x128xf32> to vector<8x128xf32>
      %41 = arith.addf %38, %40 : vector<8x128xf32>
      %c0_24 = arith.constant 0 : index
      %c0_25 = arith.constant 0 : index
      %42 = vector.load %arg6[%c0_24, %c0_25] : memref<8x128xf32, #tpu.memory_space<vmem>>, vector<8x128xf32>
      tpu.vector_store %arg6[%c0_24, %c0_25], %41 {strides = array<i32>} : memref<8x128xf32, #tpu.memory_space<vmem>>, vector<8x128xf32>,
    } else {
    }
    %c1_i32_9 = arith.constant 1 : i32
    %25 = arith.cmpi sge, %21, %c1_i32_9 : i32
    %26 = arith.extui %25 : i1 to i32
    %c0_i32_10 = arith.constant 0 : i32
    %27 = arith.cmpi ne, %26, %c0_i32_10 : i32
    scf.if %27 {
      %c16_i32 = arith.constant 16 : i32
      %28 = arith.muli %21, %c16_i32 : i32
      %c16_i32_11 = arith.constant 16 : i32
      %29 = arith.subi %c16_i32_11, %28 : i32
      %30 = tpu.iota {dimensions = array<i32: 0>} : vector<16x128xi32>
      %31 = vector.broadcast %29 : i32 to vector<16x128xi32>
      %32 = arith.cmpi slt, %30, %31 : vector<16x128xi32>
      %cst_12 = arith.constant 0.000000e+00 : f32
      %33 = vector.broadcast %cst_12 : f32 to vector<16x128xf32>
      %34 = arith.select %32, %4, %33 : vector<16x128xi1>, vector<16x128xf32>
      %cst_13 = arith.constant 0.000000e+00 : f32
      %35 = vector.broadcast %cst_13 : f32 to vector<16x128xf32>
      %36 = arith.select %32, %15, %35 : vector<16x128xi1>, vector<16x128xf32>
      %cst_14 = arith.constant 0.000000e+00 : f32
      %37 = vector.broadcast %cst_14 : f32 to vector<16x128xf32>
      %38 = arith.select %32, %19, %37 : vector<16x128xi1>, vector<16x128xf32>
      %c0_15 = arith.constant 0 : index
      %c0_16 = arith.constant 0 : index
      %39 = vector.load %arg4[%c0_15, %c0_16] : memref<8x128xf32, #tpu.memory_space<vmem>>, vector<8x128xf32>
      %40 = vector.shape_cast %34 : vector<16x128xf32> to vector<2x8x128xf32>
      %cst_17 = arith.constant dense<0.000000e+00> : vector<8x128xf32>
      %41 = vector.multi_reduction <add>, %40, %cst_17 [0] : vector<2x8x128xf32> to vector<8x128xf32>
      %42 = arith.addf %39, %41 : vector<8x128xf32>
      %c0_18 = arith.constant 0 : index
      %c0_19 = arith.constant 0 : index
      %43 = vector.load %arg4[%c0_18, %c0_19] : memref<8x128xf32, #tpu.memory_space<vmem>>, vector<8x128xf32>
      tpu.vector_store %arg4[%c0_18, %c0_19], %42 {strides = array<i32>} : memref<8x128xf32, #tpu.memory_space<vmem>>, vector<8x128xf32>,
      %c0_20 = arith.constant 0 : index
      %c0_21 = arith.constant 0 : index
      %44 = vector.load %arg5[%c0_20, %c0_21] : memref<8x128xf32, #tpu.memory_space<vmem>>, vector<8x128xf32>
      %45 = vector.shape_cast %36 : vector<16x128xf32> to vector<2x8x128xf32>
      %cst_22 = arith.constant dense<0.000000e+00> : vector<8x128xf32>
      %46 = vector.multi_reduction <add>, %45, %cst_22 [0] : vector<2x8x128xf32> to vector<8x128xf32>
      %47 = arith.addf %44, %46 : vector<8x128xf32>
      %c0_23 = arith.constant 0 : index
      %c0_24 = arith.constant 0 : index
      %48 = vector.load %arg5[%c0_23, %c0_24] : memref<8x128xf32, #tpu.memory_space<vmem>>, vector<8x128xf32>
      tpu.vector_store %arg5[%c0_23, %c0_24], %47 {strides = array<i32>} : memref<8x128xf32, #tpu.memory_space<vmem>>, vector<8x128xf32>,
      %c0_25 = arith.constant 0 : index
      %c0_26 = arith.constant 0 : index
      %49 = vector.load %arg6[%c0_25, %c0_26] : memref<8x128xf32, #tpu.memory_space<vmem>>, vector<8x128xf32>
      %50 = vector.shape_cast %38 : vector<16x128xf32> to vector<2x8x128xf32>
      %cst_27 = arith.constant dense<0.000000e+00> : vector<8x128xf32>
      %51 = vector.multi_reduction <add>, %50, %cst_27 [0] : vector<2x8x128xf32> to vector<8x128xf32>
      %52 = arith.addf %49, %51 : vector<8x128xf32>
      %c0_28 = arith.constant 0 : index
      %c0_29 = arith.constant 0 : index
      %53 = vector.load %arg6[%c0_28, %c0_29] : memref<8x128xf32, #tpu.memory_space<vmem>>, vector<8x128xf32>
      tpu.vector_store %arg6[%c0_28, %c0_29], %52 {strides = array<i32>} : memref<8x128xf32, #tpu.memory_space<vmem>>, vector<8x128xf32>,
    } else {
    }
    return
  }
  func.func @transform_0(%arg0: i32, %arg1: i32) -> (i32, i32) {
    %c1_i32 = arith.constant 1 : i32
    %0 = arith.muli %arg0, %c1_i32 : i32
    %1 = arith.addi %0, %arg1 : i32
    %c0_i32 = arith.constant 0 : i32
    %2 = arith.minsi %1, %c0_i32 : i32
    %c0_i32_0 = arith.constant 0 : i32
    %c0_i32_1 = arith.constant 0 : i32
    return %2, %c0_i32_0 : i32, i32
  }
  func.func @transform_1(%arg0: i32, %arg1: i32) -> (i32, i32) {
    %c1_i32 = arith.constant 1 : i32
    %0 = arith.muli %arg0, %c1_i32 : i32
    %1 = arith.addi %0, %arg1 : i32
    %c0_i32 = arith.constant 0 : i32
    %2 = arith.minsi %1, %c0_i32 : i32
    %c0_i32_0 = arith.constant 0 : i32
    %c0_i32_1 = arith.constant 0 : i32
    return %2, %c0_i32_0 : i32, i32
  }
  func.func @transform_2(%arg0: i32, %arg1: i32) -> (i32, i32) {
    %c0_i32 = arith.constant 0 : i32
    %c0_i32_0 = arith.constant 0 : i32
    return %arg0, %c0_i32 : i32, i32
  }
  func.func @transform_3(%arg0: i32, %arg1: i32) -> (i32, i32) {
    %c0_i32 = arith.constant 0 : i32
    %c0_i32_0 = arith.constant 0 : i32
    return %arg0, %c0_i32 : i32, i32
  }
  func.func @transform_4(%arg0: i32, %arg1: i32) -> (i32, i32) {
    %c0_i32 = arith.constant 0 : i32
    %c0_i32_0 = arith.constant 0 : i32
    return %arg0, %c0_i32 : i32, i32
  }
}

</mosaic_0001>

<bundles_post_ra>
// kernel: tpu_custom_call.1
= control target key start
LH: loop header
LB: loop body
LE: loop exit
PB: predicated region body
PF: predicated region fallthrough
CT: control target
= control target key end

     0   :  { %10 = vsyncpa [#allocation3], 0  ;;  %s445_s0 = inlined_call_operand.hbm [shape: f32[16,128], index: 0, kind: input, shape index: {}]   ;;  %s446_s1 = inlined_call_operand.hbm [shape: f32[16,128], index: 1, kind: input, shape index: {}]   ;;  %s447_s2 = inlined_call_operand.hbm [shape: f32[8,128], index: 2, kind: output, shape index: {0}]   ;;  %s448_s3 = inlined_call_operand.hbm [shape: f32[8,128], index: 3, kind: output, shape index: {1}]   ;;  %s449_s4 = inlined_call_operand.hbm [shape: f32[8,128], index: 4, kind: output, shape index: {2}]  }
   0x1   :  { %11 = vsyncpa [#allocation6], 0 }
   0x2   :  { %12 = vsyncpa [#allocation4], 0 }
   0x3   :  { %13 = vsyncpa [#allocation9], 0  ;;  %s343_s15 = smov [#allocation2]   ;;  %s225_s19 = scalar_lea.hbm %s445_s0, 256 }
   0x4   :  { %s25_s16 = sshll.u32 %s343_s15, 4  ;;  %p226_p0 = scmp.ne.s32.totalorder %s445_s0, %s225_s19  ;;  %s26_s16 = int_to_ptr.vmem [resolvable:$true] %s25_s16 }
   0x5   :  { %p229_p1 = scmp.lt.u32.totalorder %s225_s19, %s445_s0 }
   0x7   :  { %p231_p2 = pnand %p229_p1, %p226_p0 }
   0x9   :  { %234 = shalt.err (!%p231_p2)
}
   0xa   :  { %s235_s24 = scalar_lea.vmem %s26_s16, 256  ;;  %p240_p4 = scmp.lt.s32.totalorder %s26_s16, %s26_s16 }
   0xb   :  { %p236_p3 = scmp.ne.s32.totalorder %s26_s16, %s235_s24  ;;  %p241_p5 = scmp.lt.s32.totalorder %s235_s24, %s235_s24 }
   0xd   :  { %p242_p6 = por %p241_p5, %p240_p4 }
   0xf   :  { %p243_p7 = pnand %p242_p6, %p236_p3 }
  0x11   :  { %246 = shalt.err (!%p243_p7)
}
  0x12   :  { %s344_s25 = smov 128   ;;  %s345_s26 = smov 8  }
  0x13   :  { %31 = dma.hbm_to_vmem [thread:$0]  %s445_s0, 256, %s26_s16, [#allocation3], %s344_s25, %s344_s25, %s345_s26  }
  0x14   :  { %s346_s29 = smov [#allocation5]   ;;  %s247_s7 = scalar_lea.hbm %s446_s1, 256 }
  0x15   :  { %s43_s30 = sshll.u32 %s346_s29, 4  ;;  %p248_p8 = scmp.ne.s32.totalorder %s446_s1, %s247_s7  ;;  %s44_s30 = int_to_ptr.vmem [resolvable:$true] %s43_s30 }
  0x16   :  { %p251_p9 = scmp.lt.u32.totalorder %s247_s7, %s446_s1 }
  0x18   :  { %p253_p10 = pnand %p251_p9, %p248_p8 }
  0x1a   :  { %256 = shalt.err (!%p253_p10)
}
  0x1b   :  { %s257_s12 = scalar_lea.vmem %s44_s30, 256  ;;  %p262_p12 = scmp.lt.s32.totalorder %s44_s30, %s44_s30 }
  0x1c   :  { %p258_p11 = scmp.ne.s32.totalorder %s44_s30, %s257_s12  ;;  %p263_p13 = scmp.lt.s32.totalorder %s257_s12, %s257_s12 }
  0x1e   :  { %p264_p0 = por %p263_p13, %p262_p12 }
  0x20   :  { %p265_p1 = pnand %p264_p0, %p258_p11 }
  0x22   :  { %268 = shalt.err (!%p265_p1)
}
  0x23   :  { %49 = dma.hbm_to_vmem [thread:$0]  %s446_s1, 256, %s44_s30, [#allocation6], %s344_s25, %s344_s25, %s345_s26  }
  0x24   :  { %335 = dma.done.wait [#allocation3], 256  }
  0x25   :  { %336 = vsyncadd [#allocation3], 4294967040 }
  0x26   :  { %337 = dma.done.wait [#allocation6], 256  }
  0x27   :  { %338 = vsyncadd [#allocation6], 4294967040  ;;  %v71_v0 = vld [vmem:[#allocation2] sm:$0xff]  ;;  %v72_v1 = vld [vmem:[#allocation2 + $0x8] sm:$0xff]  ;;  %s347_s14 = smov [#allocation7]  }
  0x28   :  { %v399_v2 = vld [vmem:[#allocation5] sm:$0xff]  ;;  %v401_v3 = vld [vmem:[#allocation5 + $0x8] sm:$0xff]  ;;  %v79_v4 = vand.u32 2147483647, %v71_v0  ;;  %s168_s15 = sshll.u32 %s347_s14, 4  ;;  %s169_s15 = int_to_ptr.vmem [resolvable:$true] %s168_s15 }
  0x29   :  { %v80_v5 = vand.u32 2147483647, %v72_v1  ;;  %v121_v6 = vadd.f32 %v401_v3, %v399_v2  ;;  %s269_s1 = scalar_lea.vmem %s169_s15, 128  ;;  %p274_p3 = scmp.lt.s32.totalorder %s169_s15, %s169_s15 }
  0x2a   :  { %v81_v7 = vsub.f32 0.0, %v79_v4  ;;  %p270_p2 = scmp.ne.s32.totalorder %s169_s15, %s269_s1  ;;  %p275_p4 = scmp.lt.s32.totalorder %s269_s1, %s269_s1 }
  0x2b   :  { %v82_v8 = vsub.f32 0.0, %v80_v5  ;;  %123 = vst [vmem:[#allocation7] sm:$0xff] %v121_v6 }
  0x2c   :  { %v83_v9 = vmul.f32 1.442695, %v81_v7  ;;  %p276_p5 = por %p275_p4, %p274_p3 }
  0x2d   :  { %v85_v10 = vmul.f32 1.442695, %v82_v8 }
  0x2e   :  { %217 = vpow2.f32 %v83_v9  ;;  %p277_p6 = pnand %p276_p5, %p270_p2 }
  0x30   :  { %280 = shalt.err (!%p277_p6)
}
  0x31   :  { %s281_s18 = scalar_lea.hbm %s447_s2, 128 }
  0x32   :  { %p282_p7 = scmp.ne.s32.totalorder %s447_s2, %s281_s18  ;;  %p285_p8 = scmp.lt.u32.totalorder %s281_s18, %s447_s2 }
  0x34   :  { %p287_p9 = pnand %p285_p8, %p282_p7 }
  0x36   :  { %290 = shalt.err (!%p287_p9)
}
  0x37   :  { %171 = dma.vmem_to_hbm [thread:$0]  %s169_s15, 128, %s447_s2, [#allocation4]   ;;  %219 = vpow2.f32 %v85_v10  ;;  %v75_v18 = vsub.f32 0.0, %v71_v0  ;;  %v76_v21 = vsub.f32 0.0, %v72_v1  ;;  %v109_v34 = vsub.f32 1.0, %v399_v2 }
  0x38   :  { %v218_v11 = vpop.eup %217  ;;  %v110_v36 = vsub.f32 1.0, %v401_v3  ;;  %s348_s2 = smov [#allocation8]   ;;  %s349_s26 = smov [#allocation10]  }
  0x39   :  { %v87_v13 = vadd.f32 1.0, %v218_v11  ;;  %v90_v15 = vmul.f32 -0.5, %v218_v11  ;;  %v93_v19 = vand.u32 2147483647, %v218_v11  ;;  %v77_v25 = vmax.f32 %v75_v18, 0.0  ;;  %s178_s25 = sshll.u32 %s348_s2, 4  ;;  %s179_s25 = int_to_ptr.vmem [resolvable:$true] %s178_s25 }
  0x3a   :  { %v78_v28 = vmax.f32 %v76_v21, 0.0  ;;  %s188_s27 = sshll.u32 %s349_s26, 4  ;;  %s291_s28 = scalar_lea.vmem %s179_s25, 128  ;;  %s189_s27 = int_to_ptr.vmem [resolvable:$true] %s188_s27 }
  0x3b   :  { %221 = vlog2.f32 %v87_v13  ;;  %v91_v17 = vadd.f32 1.0, %v90_v15  ;;  %vm94_vm0 = vcmp.lt.f32.partialorder %v93_v19, 0.0004427343  ;;  %p292_p10 = scmp.ne.s32.totalorder %s179_s25, %s291_s28  ;;  %p296_p11 = scmp.lt.s32.totalorder %s179_s25, %s179_s25 }
  0x3c   :  { %p297_p12 = scmp.lt.s32.totalorder %s291_s28, %s291_s28 }
  0x3d   :  { %v92_v23 = vmul.f32 %v218_v11, %v91_v17 }
  0x3e   :  { %p298_p13 = por %p297_p12, %p296_p11 }
  0x40   :  { %p299_p0 = pnand %p298_p13, %p292_p10 }
  0x41   :  { %v220_v12 = vpop.eup %219 }
  0x42   :  { %v96_v14 = vadd.f32 1.0, %v220_v12  ;;  %v99_v16 = vmul.f32 -0.5, %v220_v12  ;;  %v102_v22 = vand.u32 2147483647, %v220_v12 }
  0x44   :  { %223 = vlog2.f32 %v96_v14  ;;  %v100_v20 = vadd.f32 1.0, %v99_v16  ;;  %vm103_vm1 = vcmp.lt.f32.partialorder %v102_v22, 0.0004427343 }
  0x45   :  { %v222_v24 = vpop.eup %221 }
  0x46   :  { %v101_v26 = vmul.f32 %v220_v12, %v100_v20  ;;  %v89_v29 = vmul.f32 0.6931472, %v222_v24 }
  0x48   :  { %v95_v31 = vsel %vm94_vm0, %v92_v23, %v89_v29 }
  0x49   :  { %v105_v33 = vadd.f32 %v95_v31, %v77_v25 }
  0x4b   :  { %v107_v37 = vmul.f32 %v105_v33, %v399_v2  ;;  %v111_v38 = vadd.f32 %v105_v33, %v71_v0 }
  0x4d   :  { %v113_v41 = vmul.f32 %v111_v38, %v109_v34 }
  0x4e   :  { %v224_v27 = vpop.eup %223 }
  0x4f   :  { %v98_v30 = vmul.f32 0.6931472, %v224_v27 }
  0x51   :  { %v104_v32 = vsel %vm103_vm1, %v101_v26, %v98_v30 }
  0x52   :  { %v106_v35 = vadd.f32 %v104_v32, %v78_v28 }
  0x54   :  { %v108_v39 = vmul.f32 %v106_v35, %v401_v3  ;;  %v112_v40 = vadd.f32 %v106_v35, %v72_v1 }
  0x56   :  { %v125_v42 = vadd.f32 %v108_v39, %v107_v37  ;;  %v114_v43 = vmul.f32 %v112_v40, %v110_v36 }
  0x58   :  { %v129_v44 = vadd.f32 %v114_v43, %v113_v41  ;;  %127 = vst [vmem:[#allocation8] sm:$0xff] %v125_v42 }
  0x59   :  { %302 = shalt.err (!%p299_p0)
}
  0x5a   :  { %s303_s5 = scalar_lea.hbm %s448_s3, 128 }
  0x5b   :  { %p304_p1 = scmp.ne.s32.totalorder %s448_s3, %s303_s5  ;;  %p307_p2 = scmp.lt.u32.totalorder %s303_s5, %s448_s3 }
  0x5d   :  { %p309_p3 = pnand %p307_p2, %p304_p1 }
  0x5f   :  { %312 = shalt.err (!%p309_p3)
}
  0x60   :  { %181 = dma.vmem_to_hbm [thread:$0]  %s179_s25, 128, %s448_s3, [#allocation9]   ;;  %131 = vst [vmem:[#allocation10] sm:$0xff] %v129_v44 }
  0x61   :  { %s313_s12 = scalar_lea.vmem %s189_s27, 128  ;;  %p318_p5 = scmp.lt.s32.totalorder %s189_s27, %s189_s27 }
  0x62   :  { %p314_p4 = scmp.ne.s32.totalorder %s189_s27, %s313_s12  ;;  %p319_p6 = scmp.lt.s32.totalorder %s313_s12, %s313_s12 }
  0x64   :  { %p320_p7 = por %p319_p6, %p318_p5 }
  0x66   :  { %p321_p8 = pnand %p320_p7, %p314_p4 }
  0x68   :  { %324 = shalt.err (!%p321_p8)
}
  0x69   :  { %s325_s14 = scalar_lea.hbm %s449_s4, 128 }
  0x6a   :  { %p326_p9 = scmp.ne.s32.totalorder %s449_s4, %s325_s14  ;;  %p329_p10 = scmp.lt.u32.totalorder %s325_s14, %s449_s4 }
  0x6c   :  { %p331_p11 = pnand %p329_p10, %p326_p9 }
  0x6e   :  { %334 = shalt.err (!%p331_p11)
}
  0x6f   :  { %191 = dma.vmem_to_hbm [thread:$0]  %s189_s27, 128, %s449_s4, [#allocation9]  }
  0x70   :  { %339 = dma.done.wait [#allocation4], 128  }
  0x71   :  { %340 = vsyncadd [#allocation4], 4294967168 }
  0x72   :  { %341 = dma.done.wait [#allocation9], 256  }
  0x73   :  { %342 = vsyncadd [#allocation9], 4294967040 }
  0x74   :  { %201 = vsyncpa [#allocation3], 1 }
  0x75   :  { %202 = vsyncpa [#allocation6], 1 }
  0x76   :  { %203 = vsyncpa [#allocation4], 1 }
  0x77   :  { %204 = vsyncpa [#allocation9], 1 }

</bundles_post_ra>
